<compile_context>
chip_gen: v6e
topology: v6e:2x2x1
jax: 0.10.0
libtpu: 0.0.40
codegen_flags: <defaults>
</compile_context>

<pallas_src>
import numpy as np
import jax
import jax.numpy as jnp
from jax.experimental import pallas as pl
from jax.experimental.pallas import tpu as pltpu


NEG_SLOPE = 0.01   # PyTorch nn.LeakyReLU() default negative_slope


def _leaky_relu(x):
    return jnp.where(x > 0, x, NEG_SLOPE * x)


def discriminator_kernel(x_ref, w1_ref, w23_ref, bw_ref, out_ref):
    # bw_ref layout (f32, (8,256)):
    #   row 0: b1 (256)         row 1: b2 in lanes 0:64 (rest 0)
    #   row 2: b3 in lanes 0:32 row 3: b4 replicated across all lanes
    #   row 4: w4 flattened in lanes 0:32 (rest 0)
    # w23_ref layout (bf16, (384,128)): rows 0:256 = w2, rows 256:384 = w3.

    # Layer 1: Linear(in_dim_pad, 256) + LeakyReLU
    h = jnp.dot(x_ref[...].astype(jnp.bfloat16), w1_ref[...],
                preferred_element_type=jnp.float32)
    h = _leaky_relu(h + bw_ref[0:1, :])
    # TODO(synk): Dropout(p=0.1) is eval-mode identity; training-mode masking
    # would use pltpu.prng_seed / pltpu.prng_random_bits.

    # Layer 2: Linear(256, 64 -> lane-padded 128) + LeakyReLU
    h = jnp.dot(h.astype(jnp.bfloat16), w23_ref[0:256, :],
                preferred_element_type=jnp.float32)
    h = _leaky_relu(h + bw_ref[1:2, 0:128])

    # Layer 3: Linear(64, 32 -> lane-padded 128) + LeakyReLU
    h = jnp.dot(h.astype(jnp.bfloat16), w23_ref[256:384, :],
                preferred_element_type=jnp.float32)
    h = _leaky_relu(h + bw_ref[2:3, 0:128])

    # Head: Linear(32, 1) as VPU multiply + lane (XLU) reduction, f32 exact.
    w4_row = bw_ref[4:5, 0:128]                                   # (1,128) f32
    logit = jnp.sum(h * w4_row, axis=-1, keepdims=True)           # (bm,1)
    z = jnp.broadcast_to(logit, out_ref.shape) + bw_ref[3:4, 0:128]
    out_ref[...] = jax.nn.sigmoid(z)                              # lane-dense store


def init_discriminator_params(key, img_dims):
    """PyTorch-default Linear init: U(-1/sqrt(fan_in), +1/sqrt(fan_in)).
    Weights stored as (in, out) so forward is `x @ W + b`."""
    in_dim = int(np.prod(img_dims))
    dims = [in_dim, 256, 64, 32, 1]
    params = {}
    keys = jax.random.split(key, 2 * (len(dims) - 1))
    for li in range(len(dims) - 1):
        fan_in, fan_out = dims[li], dims[li + 1]
        bound = 1.0 / np.sqrt(fan_in)
        params[f"w{li + 1}"] = jax.random.uniform(
            keys[2 * li], (fan_in, fan_out), minval=-bound, maxval=bound,
            dtype=jnp.float32)
        params[f"b{li + 1}"] = jax.random.uniform(
            keys[2 * li + 1], (fan_out,), minval=-bound, maxval=bound,
            dtype=jnp.float32)
    return params


def pack_discriminator_params(params):
    """Pack into 3 device arrays (3 input DMAs besides x):
       w1   : (k_pad, 256) bf16, in_dim zero-padded to a multiple of 256
       w23  : (384, 128)  bf16, rows 0:256 = w2 (64 real cols), 256:320 = w3
       bw   : (8, 256)    f32,  rows 0-3 = biases, row 4 = w4 row.
    All padding is exactly zero (required for downstream correctness since
    LeakyReLU(0 + nonzero_bias) != 0)."""
    in_dim = params["w1"].shape[0]
    k_pad = ((in_dim + 255) // 256) * 256

    w1 = (jnp.zeros((k_pad, 256), jnp.float32)
          .at[:in_dim, :].set(params["w1"]).astype(jnp.bfloat16))

    w23 = jnp.zeros((384, 128), jnp.float32)
    w23 = w23.at[0:256, 0:64].set(params["w2"])
    w23 = w23.at[256:320, 0:32].set(params["w3"])
    w23 = w23.astype(jnp.bfloat16)

    bw = jnp.zeros((8, 256), jnp.float32)
    bw = bw.at[0, :256].set(params["b1"])
    bw = bw.at[1, :64].set(params["b2"])
    bw = bw.at[2, :32].set(params["b3"])
    bw = bw.at[3, :].set(params["b4"][0])      # b4 replicated across lanes
    bw = bw.at[4, :32].set(params["w4"][:, 0])  # head weight as a row
    return (w1, w23, bw)


def discriminator_forward(img, packed):
    """img: (batch, *img_dims) f32.  Returns (batch, 1) f32 probabilities.
    Call-site note: keep `packed` as persistent device arrays and feed
    real+fake examples through one call (concatenated batch) in a GAN step."""
    w1, w23, bw = packed
    k_pad = w1.shape[0]

    batch = img.shape[0]
    x = img.reshape(batch, -1).astype(jnp.float32)    # img.view(img.size(0), -1)
    in_dim = x.shape[1]
    if in_dim < k_pad:                                # lane-dense K for layer 1
        x = jnp.pad(x, ((0, 0), (0, k_pad - in_dim)))

    # Batch tiling: single block for small batches; for large batches a
    # parallel grid so v7x's two TensorCores each take a share of the rows.
    batch_pad = ((batch + 7) // 8) * 8
    bm = min(batch_pad, 256)
    batch_pad = ((batch_pad + bm - 1) // bm) * bm
    if batch_pad > batch:
        x = jnp.pad(x, ((0, batch_pad - batch), (0, 0)))
    grid = (batch_pad // bm,)

    # Explicit VMEM budget (double-buffered working set + headroom), clamped
    # below v7x's 64 MiB physical VMEM.
    work_bytes = (bm * k_pad * 4 + k_pad * 256 * 2 + 384 * 128 * 2
                  + 8 * 256 * 4 + bm * 128 * 4)
    vmem_limit = int(min(max(4 << 20, 2 * work_bytes + (1 << 20)), 60 << 20))

    out = pl.pallas_call(
        discriminator_kernel,
        out_shape=jax.ShapeDtypeStruct((batch_pad, 128), jnp.float32),
        grid_spec=pltpu.PrefetchScalarGridSpec(
            num_scalar_prefetch=0,
            grid=grid,
            in_specs=[
                pl.BlockSpec((bm, k_pad), lambda i: (i, 0)),     # x
                pl.BlockSpec((k_pad, 256), lambda i: (0, 0)),    # w1 (resident)
                pl.BlockSpec((384, 128), lambda i: (0, 0)),      # w2|w3 packed
                pl.BlockSpec((8, 256), lambda i: (0, 0)),        # biases + w4
            ],
            out_specs=pl.BlockSpec((bm, 128), lambda i: (i, 0)),
        ),
        compiler_params=pltpu.CompilerParams(
            dimension_semantics=("parallel",),
            vmem_limit_bytes=vmem_limit,
        ),
    )(x, w1, w23, bw)

    return out[:batch, 0:1]                           # lane-dense store, slice here


def reference_forward(img, params):
    """Pure-JAX reference with the same numerics as the kernel:
    bf16 MXU matmuls with f32 accumulation for layers 1-3, f32 elementwise,
    f32 multiply-reduce head."""
    x = img.reshape(img.shape[0], -1).astype(jnp.float32)

    def lin(h, w, b):
        return jnp.dot(h.astype(jnp.bfloat16), w.astype(jnp.bfloat16),
                       preferred_element_type=jnp.float32) + b

    h = _leaky_relu(lin(x, params["w1"], params["b1"]))
    h = _leaky_relu(lin(h, params["w2"], params["b2"]))
    h = _leaky_relu(lin(h, params["w3"], params["b3"]))
    logit = jnp.sum(h * params["w4"][:, 0], axis=-1, keepdims=True) + params["b4"]
    return jax.nn.sigmoid(logit)


if __name__ == "__main__":
    img_dims = (1, 16, 16)   # prod = 256
    batch = 8

    key = jax.random.PRNGKey(0)
    k_params, k_img = jax.random.split(key)

    params = init_discriminator_params(k_params, img_dims)
    packed = pack_discriminator_params(params)   # pack/cast once, reuse every step
    img = jax.random.normal(k_img, (batch,) + img_dims, dtype=jnp.float32)

    out = jax.block_until_ready(discriminator_forward(img, packed))
    assert out.shape == (batch, 1), out.shape

    ref = jax.block_until_ready(reference_forward(img, params))
    np.testing.assert_allclose(np.asarray(out), np.asarray(ref),
                               atol=1e-5, rtol=1e-5)

    print("KERNEL_OK")
</pallas_src>

<mosaic_0001>
module attributes {stable_mosaic.version = 11 : i64} {
  func.func @discriminator_kernel(%arg0: i32, %arg1: memref<8x256xf32, #tpu.memory_space<vmem>>, %arg2: memref<256x256xbf16, #tpu.memory_space<vmem>>, %arg3: memref<384x128xbf16, #tpu.memory_space<vmem>>, %arg4: memref<8x256xf32, #tpu.memory_space<vmem>>, %arg5: memref<8x128xf32, #tpu.memory_space<vmem>>) attributes {dimension_semantics = [#tpu.dimension_semantics<parallel>], iteration_bounds = array<i64: 1>, scalar_prefetch = 0 : i64, scratch_operands = 0 : i64, tpu.core_type = #tpu.core_type<tc>, window_params = [{transform_indices = @transform_0, window_bounds = array<i64: 8, 256>}, {pipeline_mode = #tpu.pipeline_mode<synchronous>, transform_indices = @transform_1, window_bounds = array<i64: 256, 256>}, {pipeline_mode = #tpu.pipeline_mode<synchronous>, transform_indices = @transform_2, window_bounds = array<i64: 384, 128>}, {pipeline_mode = #tpu.pipeline_mode<synchronous>, transform_indices = @transform_3, window_bounds = array<i64: 8, 256>}, {transform_indices = @transform_4, window_bounds = array<i64: 8, 128>}]} {
    %c0 = arith.constant 0 : index
    %c0_0 = arith.constant 0 : index
    %0 = vector.load %arg1[%c0, %c0_0] : memref<8x256xf32, #tpu.memory_space<vmem>>, vector<8x256xf32>
    %1 = arith.truncf %0 : vector<8x256xf32> to vector<8x256xbf16>
    %c0_1 = arith.constant 0 : index
    %c0_2 = arith.constant 0 : index
    %2 = vector.load %arg2[%c0_1, %c0_2] : memref<256x256xbf16, #tpu.memory_space<vmem>>, vector<256x256xbf16>
    %cst = arith.constant dense<0.000000e+00> : vector<8x256xf32>
    %3 = tpu.matmul %1, %2, %cst {dimension_numbers = #tpu.dot_dimension_numbers<[1], [0], [0], [1], [0, 0, 1, 1], [], []>} : vector<8x256xbf16>, vector<256x256xbf16>, vector<8x256xf32> -> vector<8x256xf32>
    %c0_3 = arith.constant 0 : index
    %c0_4 = arith.constant 0 : index
    %4 = vector.load %arg4[%c0_3, %c0_4] : memref<8x256xf32, #tpu.memory_space<vmem>>, vector<1x256xf32>
    %5 = vector.broadcast %4 : vector<1x256xf32> to vector<8x256xf32>
    %6 = arith.addf %3, %5 : vector<8x256xf32>
    %cst_5 = arith.constant 0.000000e+00 : f32
    %7 = vector.broadcast %cst_5 : f32 to vector<8x256xf32>
    %8 = arith.cmpf ogt, %6, %7 : vector<8x256xf32>
    %cst_6 = arith.constant 0.00999999977 : f32
    %9 = vector.broadcast %cst_6 : f32 to vector<8x256xf32>
    %10 = arith.mulf %9, %6 : vector<8x256xf32>
    %11 = arith.select %8, %6, %10 : vector<8x256xi1>, vector<8x256xf32>
    %12 = arith.truncf %11 : vector<8x256xf32> to vector<8x256xbf16>
    %c0_7 = arith.constant 0 : index
    %c0_8 = arith.constant 0 : index
    %13 = vector.load %arg3[%c0_7, %c0_8] : memref<384x128xbf16, #tpu.memory_space<vmem>>, vector<256x128xbf16>
    %cst_9 = arith.constant dense<0.000000e+00> : vector<8x128xf32>
    %14 = tpu.matmul %12, %13, %cst_9 {dimension_numbers = #tpu.dot_dimension_numbers<[1], [0], [0], [1], [0, 0, 1, 1], [], []>} : vector<8x256xbf16>, vector<256x128xbf16>, vector<8x128xf32> -> vector<8x128xf32>
    %c1 = arith.constant 1 : index
    %c0_10 = arith.constant 0 : index
    %15 = vector.load %arg4[%c1, %c0_10] : memref<8x256xf32, #tpu.memory_space<vmem>>, vector<1x128xf32>
    %16 = vector.broadcast %15 : vector<1x128xf32> to vector<8x128xf32>
    %17 = arith.addf %14, %16 : vector<8x128xf32>
    %cst_11 = arith.constant 0.000000e+00 : f32
    %18 = vector.broadcast %cst_11 : f32 to vector<8x128xf32>
    %19 = arith.cmpf ogt, %17, %18 : vector<8x128xf32>
    %cst_12 = arith.constant 0.00999999977 : f32
    %20 = vector.broadcast %cst_12 : f32 to vector<8x128xf32>
    %21 = arith.mulf %20, %17 : vector<8x128xf32>
    %22 = arith.select %19, %17, %21 : vector<8x128xi1>, vector<8x128xf32>
    %23 = arith.truncf %22 : vector<8x128xf32> to vector<8x128xbf16>
    %c256 = arith.constant 256 : index
    %c0_13 = arith.constant 0 : index
    %24 = vector.load %arg3[%c256, %c0_13] : memref<384x128xbf16, #tpu.memory_space<vmem>>, vector<128x128xbf16>
    %cst_14 = arith.constant dense<0.000000e+00> : vector<8x128xf32>
    %25 = tpu.matmul %23, %24, %cst_14 {dimension_numbers = #tpu.dot_dimension_numbers<[1], [0], [0], [1], [0, 0, 1, 1], [], []>} : vector<8x128xbf16>, vector<128x128xbf16>, vector<8x128xf32> -> vector<8x128xf32>
    %c2 = arith.constant 2 : index
    %c0_15 = arith.constant 0 : index
    %26 = vector.load %arg4[%c2, %c0_15] : memref<8x256xf32, #tpu.memory_space<vmem>>, vector<1x128xf32>
    %27 = vector.broadcast %26 : vector<1x128xf32> to vector<8x128xf32>
    %28 = arith.addf %25, %27 : vector<8x128xf32>
    %cst_16 = arith.constant 0.000000e+00 : f32
    %29 = vector.broadcast %cst_16 : f32 to vector<8x128xf32>
    %30 = arith.cmpf ogt, %28, %29 : vector<8x128xf32>
    %cst_17 = arith.constant 0.00999999977 : f32
    %31 = vector.broadcast %cst_17 : f32 to vector<8x128xf32>
    %32 = arith.mulf %31, %28 : vector<8x128xf32>
    %33 = arith.select %30, %28, %32 : vector<8x128xi1>, vector<8x128xf32>
    %c4 = arith.constant 4 : index
    %c0_18 = arith.constant 0 : index
    %34 = vector.load %arg4[%c4, %c0_18] : memref<8x256xf32, #tpu.memory_space<vmem>>, vector<1x128xf32>
    %35 = vector.broadcast %34 : vector<1x128xf32> to vector<8x128xf32>
    %36 = arith.mulf %33, %35 : vector<8x128xf32>
    %cst_19 = arith.constant dense<0.000000e+00> : vector<8xf32>
    %37 = vector.multi_reduction <add>, %36, %cst_19 [1] : vector<8x128xf32> to vector<8xf32>
    %38 = vector.shape_cast %37 : vector<8xf32> to vector<8x1xf32>
    %39 = vector.shape_cast %38 : vector<8x1xf32> to vector<8x1xf32>
    %40 = vector.broadcast %39 : vector<8x1xf32> to vector<8x128xf32>
    %c3 = arith.constant 3 : index
    %c0_20 = arith.constant 0 : index
    %41 = vector.load %arg4[%c3, %c0_20] : memref<8x256xf32, #tpu.memory_space<vmem>>, vector<1x128xf32>
    %42 = vector.broadcast %41 : vector<1x128xf32> to vector<8x128xf32>
    %43 = arith.addf %40, %42 : vector<8x128xf32>
    %44 = arith.negf %43 : vector<8x128xf32>
    %45 = math.exp %44 : vector<8x128xf32>
    %cst_21 = arith.constant 1.000000e+00 : f32
    %46 = vector.broadcast %cst_21 : f32 to vector<8x128xf32>
    %47 = arith.addf %46, %45 : vector<8x128xf32>
    %48 = arith.divf %46, %47 : vector<8x128xf32>
    %c0_22 = arith.constant 0 : index
    %c0_23 = arith.constant 0 : index
    %49 = vector.load %arg5[%c0_22, %c0_23] : memref<8x128xf32, #tpu.memory_space<vmem>>, vector<8x128xf32>
    tpu.vector_store %arg5[%c0_22, %c0_23], %48 {strides = array<i32>} : memref<8x128xf32, #tpu.memory_space<vmem>>, vector<8x128xf32>,
    return
  }
  func.func @transform_0(%arg0: i32) -> (i32, i32) {
    %c0_i32 = arith.constant 0 : i32
    %c0_i32_0 = arith.constant 0 : i32
    return %arg0, %c0_i32 : i32, i32
  }
  func.func @transform_1(%arg0: i32) -> (i32, i32) {
    %c0_i32 = arith.constant 0 : i32
    %c0_i32_0 = arith.constant 0 : i32
    %c0_i32_1 = arith.constant 0 : i32
    return %c0_i32, %c0_i32_0 : i32, i32
  }
  func.func @transform_2(%arg0: i32) -> (i32, i32) {
    %c0_i32 = arith.constant 0 : i32
    %c0_i32_0 = arith.constant 0 : i32
    %c0_i32_1 = arith.constant 0 : i32
    return %c0_i32, %c0_i32_0 : i32, i32
  }
  func.func @transform_3(%arg0: i32) -> (i32, i32) {
    %c0_i32 = arith.constant 0 : i32
    %c0_i32_0 = arith.constant 0 : i32
    %c0_i32_1 = arith.constant 0 : i32
    return %c0_i32, %c0_i32_0 : i32, i32
  }
  func.func @transform_4(%arg0: i32) -> (i32, i32) {
    %c0_i32 = arith.constant 0 : i32
    %c0_i32_0 = arith.constant 0 : i32
    return %arg0, %c0_i32 : i32, i32
  }
}

</mosaic_0001>

<bundles_post_ra>
// kernel: tpu_custom_call.1
= control target key start
LH: loop header
LB: loop body
LE: loop exit
PB: predicated region body
PF: predicated region fallthrough
CT: control target
= control target key end

     0   :  { %9 = vsyncpa [#allocation3], 0  ;;  %s992_s0 = inlined_call_operand.hbm [shape: f32[8,256], index: 0, kind: input, shape index: {}]   ;;  %s993_s1 = inlined_call_operand.hbm [shape: bf16[256,256], index: 1, kind: input, shape index: {}]   ;;  %s994_s2 = inlined_call_operand.hbm [shape: bf16[384,128], index: 2, kind: input, shape index: {}]   ;;  %s995_s3 = inlined_call_operand.hbm [shape: f32[8,256], index: 3, kind: input, shape index: {}]   ;;  %s996_s4 = inlined_call_operand.hbm [shape: f32[8,128], index: 4, kind: output, shape index: {}]  }
   0x1   :  { %10 = vsyncpa [#allocation6], 0 }
   0x2   :  { %11 = vsyncpa [#allocation9], 0 }
   0x3   :  { %12 = vsyncpa [#allocation4], 0  ;;  %s941_s15 = smov [#allocation5]  }
   0x4   :  { %s28_s16 = sshll.u32 %s941_s15, 4  ;;  %s29_s16 = int_to_ptr.vmem [resolvable:$true] %s28_s16 }
   0x5   :  { %s841_s17 = scalar_lea.vmem %s29_s16, 4096  ;;  %p846_p1 = scmp.lt.s32.totalorder %s29_s16, %s29_s16 }
   0x6   :  { %p842_p0 = scmp.ne.s32.totalorder %s29_s16, %s841_s17  ;;  %p847_p2 = scmp.lt.s32.totalorder %s841_s17, %s841_s17 }
   0x8   :  { %p848_p3 = por %p847_p2, %p846_p1 }
   0xa   :  { %p849_p4 = pnand %p848_p3, %p842_p0 }
   0xc   :  { %852 = shalt.err (!%p849_p4)
}
   0xd   :  { %s942_s18 = smov 128   ;;  %s943_s19 = smov 8  }
   0xe   :  { %34 = dma.hbm_to_vmem [thread:$0]  %s993_s1, 4096, %s29_s16, [#allocation6], %s942_s18, %s942_s18, %s943_s19  }
   0xf   :  { %s944_s22 = smov [#allocation2]   ;;  %s945_s24 = smov [#allocation7]  }
  0x10   :  { %s19_s23 = sshll.u32 %s944_s22, 4  ;;  %s40_s25 = sshll.u32 %s945_s24, 4  ;;  %s20_s23 = int_to_ptr.vmem [resolvable:$true] %s19_s23  ;;  %s41_s25 = int_to_ptr.vmem [resolvable:$true] %s40_s25 }
  0x11   :  { %s861_s26 = scalar_lea.vmem %s20_s23, 256  ;;  %p866_p6 = scmp.lt.s32.totalorder %s20_s23, %s20_s23 }
  0x12   :  { %p862_p5 = scmp.ne.s32.totalorder %s20_s23, %s861_s26  ;;  %p867_p7 = scmp.lt.s32.totalorder %s861_s26, %s861_s26 }
  0x14   :  { %p868_p8 = por %p867_p7, %p866_p6 }
  0x16   :  { %p869_p9 = pnand %p868_p8, %p862_p5 }
  0x18   :  { %872 = shalt.err (!%p869_p9)
}
  0x19   :  { %22 = dma.hbm_to_vmem [thread:$0]  %s992_s0, 256, %s20_s23, [#allocation3]  }
  0x1a   :  { %s881_s29 = scalar_lea.vmem %s41_s25, 3072  ;;  %p886_p11 = scmp.lt.s32.totalorder %s41_s25, %s41_s25 }
  0x1b   :  { %p882_p10 = scmp.ne.s32.totalorder %s41_s25, %s881_s29  ;;  %p887_p12 = scmp.lt.s32.totalorder %s881_s29, %s881_s29 }
  0x1d   :  { %p888_p13 = por %p887_p12, %p886_p11 }
  0x1f   :  { %p889_p0 = pnand %p888_p13, %p882_p10 }
  0x21   :  { %892 = shalt.err (!%p889_p0)
}
  0x22   :  { %s946_s1 = smov 64   ;;  %s947_s30 = smov 4  }
  0x23   :  { %46 = dma.hbm_to_vmem [thread:$0]  %s994_s2, 3072, %s41_s25, [#allocation6], %s946_s1, %s946_s1, %s947_s30  }
  0x24   :  { %s948_s7 = smov [#allocation8]  }
  0x25   :  { %s53_s8 = sshll.u32 %s948_s7, 4  ;;  %s54_s8 = int_to_ptr.vmem [resolvable:$true] %s53_s8 }
  0x26   :  { %s901_s9 = scalar_lea.vmem %s54_s8, 256  ;;  %p906_p2 = scmp.lt.s32.totalorder %s54_s8, %s54_s8 }
  0x27   :  { %p902_p1 = scmp.ne.s32.totalorder %s54_s8, %s901_s9  ;;  %p907_p3 = scmp.lt.s32.totalorder %s901_s9, %s901_s9 }
  0x29   :  { %p908_p4 = por %p907_p3, %p906_p2 }
  0x2b   :  { %p909_p5 = pnand %p908_p4, %p902_p1 }
  0x2d   :  { %912 = shalt.err (!%p909_p5)
}
  0x2e   :  { %56 = dma.hbm_to_vmem [thread:$0]  %s995_s3, 256, %s54_s8, [#allocation9]  }
  0x2f   :  { %933 = dma.done.wait [#allocation3], 256  }
  0x30   :  { %934 = vsyncadd [#allocation3], 4294967040 }
  0x31   :  { %935 = dma.done.wait [#allocation6], 7168  }
  0x32   :  { %936 = vsyncadd [#allocation6], 4294960128 }
  0x33   :  { %937 = dma.done.wait [#allocation9], 256  }
  0x34   :  { %938 = vsyncadd [#allocation9], 4294967040  ;;  %v757_v0 = vld [vmem:[#allocation5 + $0x74] ss:$8 sps:$4 sm:$0xff]   ;;  %v759_v1 = vld [vmem:[#allocation5 + $0x70] ss:$8 sps:$4 sm:$0xff]   ;;  %v108_v53 = vlaneseq }
  0x35   :  { %278 = vmatprep.subr.bf16.mxu0 %v757_v0  ;;  %v760_v2 = vld [vmem:[#allocation5 + $0x64] ss:$8 sps:$4 sm:$0xff]   ;;  %v762_v3 = vld [vmem:[#allocation5 + $0x60] ss:$8 sps:$4 sm:$0xff]   ;;  %v763_v4 = vld [vmem:[#allocation5 + $0x54] ss:$8 sps:$4 sm:$0xff]  }
  0x36   :  { %279 = vmatpush1.bf16.msra.mxu0 %v759_v1  ;;  %v765_v5 = vld [vmem:[#allocation5 + $0x50] ss:$8 sps:$4 sm:$0xff]   ;;  %v766_v6 = vld [vmem:[#allocation5 + $0x44] ss:$8 sps:$4 sm:$0xff]   ;;  %v768_v7 = vld [vmem:[#allocation5 + $0x40] ss:$8 sps:$4 sm:$0xff]  }
  0x37   :  { %280 = vmatprep.subr.bf16.mxu0 %v760_v2  ;;  %v769_v8 = vld [vmem:[#allocation5 + $0x34] ss:$8 sps:$4 sm:$0xff]   ;;  %v771_v9 = vld [vmem:[#allocation5 + $0x30] ss:$8 sps:$4 sm:$0xff]   ;;  %v772_v10 = vld [vmem:[#allocation5 + $0x24] ss:$8 sps:$4 sm:$0xff]  }
  0x38   :  { %v774_v11 = vld [vmem:[#allocation5 + $0x20] ss:$8 sps:$4 sm:$0xff]   ;;  %v775_v12 = vld [vmem:[#allocation5 + $0x14] ss:$8 sps:$4 sm:$0xff]   ;;  %v777_v13 = vld [vmem:[#allocation5 + $0x10] ss:$8 sps:$4 sm:$0xff]  }
  0x39   :  { %v71_v14 = vld [vmem:[#allocation2 + $0x8] sm:$0xff]  ;;  %v778_v15 = vld [vmem:[#allocation5 + $0x4] ss:$8 sps:$4 sm:$0xff]   ;;  %v807_v19 = vld [vmem:[#allocation7 + $0x70] sm:$0xff]   ;;  %v949_v52 = vmov 0.0   ;;  %v109_v54 = vshrl.u32 %v108_v53, 7 }
  0x3a   :  { %281 = vmatpush1.bf16.msra.mxu0 %v762_v3  ;;  %v73_v16 = vpack.c.bf16 %v71_v14, %v71_v14  ;;  %v805_v17 = vld [vmem:[#allocation7 + $0x78] sm:$0xff]   ;;  %v780_v20 = vld [vmem:[#allocation5] ss:$8 sps:$4 sm:$0xff]   ;;  %v808_v21 = vld [vmem:[#allocation7 + $0x30] sm:$0xff]   ;;  %vm950_vm2 = vmmov 0   ;;  %s951_s2 = smov [#allocation10]  }
  0x3b   :  { %282 = vmatprep.subr.bf16.mxu0 %v763_v4  ;;  %v806_v18 = vld [vmem:[#allocation7 + $0x38] sm:$0xff]   ;;  %695 = vmatprep.subr.bf16.mxu1 %v805_v17  ;;  %v809_v22 = vld [vmem:[#allocation7 + $0x68] sm:$0xff]   ;;  %v811_v26 = vld [vmem:[#allocation7 + $0x60] sm:$0xff]   ;;  %v110_v55 = vsub.s32 0, %v109_v54  ;;  %v114_v57 = vsub.s32 1, %v109_v54  ;;  %s627_s3 = sshll.u32 %s951_s2, 4  ;;  %s628_s3 = int_to_ptr.vmem [resolvable:$true] %s627_s3 }
  0x3c   :  { %310 = vmatprep.mubr.bf16.mxu0 %v73_v16  ;;  %696 = vmatpush3.bf16.msra.mxu1 %v806_v18  ;;  %v781_v23 = vld [vmem:[#allocation5 + $0xf4] ss:$8 sps:$4 sm:$0xff]   ;;  %v783_v24 = vld [vmem:[#allocation5 + $0xf0] ss:$8 sps:$4 sm:$0xff]   ;;  %v810_v25 = vld [vmem:[#allocation7 + $0x28] sm:$0xff]   ;;  %s913_s11 = scalar_lea.vmem %s628_s3, 128  ;;  %p918_p7 = scmp.lt.s32.totalorder %s628_s3, %s628_s3 }
  0x3d   :  { %697 = vmatprep.subr.bf16.mxu1 %v807_v19  ;;  %v784_v27 = vld [vmem:[#allocation5 + $0xe4] ss:$8 sps:$4 sm:$0xff]   ;;  %v786_v28 = vld [vmem:[#allocation5 + $0xe0] ss:$8 sps:$4 sm:$0xff]   ;;  %v813_v30 = vld [vmem:[#allocation7 + $0x58] sm:$0xff]   ;;  %p914_p6 = scmp.ne.s32.totalorder %s628_s3, %s913_s11  ;;  %p919_p8 = scmp.lt.s32.totalorder %s913_s11, %s913_s11 }
  0x3e   :  { %283 = vmatpush1.bf16.msra.mxu0 %v765_v5  ;;  %v812_v29 = vld [vmem:[#allocation7 + $0x20] sm:$0xff]   ;;  %v787_v31 = vld [vmem:[#allocation5 + $0xd4] ss:$8 sps:$4 sm:$0xff]   ;;  %v789_v33 = vld [vmem:[#allocation5 + $0xd0] ss:$8 sps:$4 sm:$0xff]  }
  0x3f   :  { %284 = vmatprep.subr.bf16.mxu0 %v766_v6  ;;  %v814_v32 = vld [vmem:[#allocation7 + $0x18] sm:$0xff]   ;;  %v815_v34 = vld [vmem:[#allocation7 + $0x50] sm:$0xff]   ;;  %v790_v35 = vld [vmem:[#allocation5 + $0xc4] ss:$8 sps:$4 sm:$0xff]   ;;  %p920_p9 = por %p919_p8, %p918_p7 }
  0x40   :  { %698 = vmatpush3.bf16.msra.mxu1 %v808_v21  ;;  %v792_v36 = vld [vmem:[#allocation5 + $0xc0] ss:$8 sps:$4 sm:$0xff]   ;;  %v793_v37 = vld [vmem:[#allocation5 + $0xb4] ss:$8 sps:$4 sm:$0xff]   ;;  %v795_v38 = vld [vmem:[#allocation5 + $0xb0] ss:$8 sps:$4 sm:$0xff]  }
  0x41   :  { %699 = vmatprep.subr.bf16.mxu1 %v809_v22  ;;  %v796_v39 = vld [vmem:[#allocation5 + $0xa4] ss:$8 sps:$4 sm:$0xff]   ;;  %v798_v40 = vld [vmem:[#allocation5 + $0xa0] ss:$8 sps:$4 sm:$0xff]   ;;  %v799_v41 = vld [vmem:[#allocation5 + $0x94] ss:$8 sps:$4 sm:$0xff]   ;;  %p921_p10 = pnand %p920_p9, %p914_p6 }
  0x42   :  { %285 = vmatpush1.bf16.msra.mxu0 %v768_v7  ;;  %v801_v42 = vld [vmem:[#allocation5 + $0x90] ss:$8 sps:$4 sm:$0xff]   ;;  %v802_v43 = vld [vmem:[#allocation5 + $0x84] ss:$8 sps:$4 sm:$0xff]   ;;  %v804_v44 = vld [vmem:[#allocation5 + $0x80] ss:$8 sps:$4 sm:$0xff]  }
  0x43   :  { %286 = vmatprep.subr.bf16.mxu0 %v769_v8  ;;  %v70_v45 = vld [vmem:[#allocation2] sm:$0xff]  ;;  %v817_v48 = vld [vmem:[#allocation7 + $0x48] sm:$0xff]   ;;  %v819_v50 = vld [vmem:[#allocation7 + $0x40] sm:$0xff]  }
  0x44   :  { %700 = vmatpush3.bf16.msra.mxu1 %v810_v25  ;;  %v72_v46 = vpack.c.bf16 %v70_v45, %v70_v45  ;;  %v816_v47 = vld [vmem:[#allocation7 + $0x10] sm:$0xff]   ;;  %v818_v49 = vld [vmem:[#allocation7 + $0x8] sm:$0xff]   ;;  %v820_v51 = vld [vmem:[#allocation7] sm:$0xff]  }
  0x45   :  { %701 = vmatprep.subr.bf16.mxu1 %v811_v26  ;;  %v106_v56 = vld [vmem:[#allocation8] ss:$8 sm:$0x3]  ;;  %v821_v7 = vld [vmem:[#allocation7 + $0xb8] sm:$0xff]   ;;  %v359_v17 = vld [vmem:[#allocation8 + $0x1] ss:$0 sm:$0xff] }
  0x46   :  { %287 = vmatpush1.bf16.msra.mxu0 %v771_v9  ;;  %v111_v58 = vrot.slane %v106_v56, %v110_v55  ;;  %v115_v59 = vrot.slane %v106_v56, %v114_v57  ;;  %v822_v9 = vld [vmem:[#allocation7 + $0xb0] sm:$0xff]   ;;  %v827_v14 = vld [vmem:[#allocation7 + $0x88] sm:$0xff]   ;;  %v516_v26 = vld [vmem:[#allocation8 + $0x2] ss:$0 sm:$0xff] }
  0x47   :  { %288 = vmatprep.subr.bf16.mxu0 %v772_v10  ;;  %v823_v10 = vld [vmem:[#allocation7 + $0xa8] sm:$0xff]  }
  0x48   :  { %702 = vmatpush3.bf16.msra.mxu1 %v812_v29 }
  0x49   :  { %703 = vmatprep.subr.bf16.mxu1 %v813_v30 }
  0x4a   :  { %289 = vmatpush1.bf16.msra.mxu0 %v774_v11  ;;  %v824_v11 = vld [vmem:[#allocation7 + $0xa0] sm:$0xff]  }
  0x4b   :  { %290 = vmatprep.subr.bf16.mxu0 %v775_v12  ;;  %v825_v12 = vld [vmem:[#allocation7 + $0x98] sm:$0xff]  }
  0x4c   :  { %704 = vmatpush3.bf16.msra.mxu1 %v814_v32 }
  0x4d   :  { %705 = vmatprep.subr.bf16.mxu1 %v815_v34 }
  0x4e   :  { %291 = vmatpush1.bf16.msra.mxu0 %v777_v13  ;;  %v826_v13 = vld [vmem:[#allocation7 + $0x90] sm:$0xff]  }
  0x4f   :  { %292 = vmatprep.subr.bf16.mxu0 %v778_v15  ;;  %v828_v15 = vld [vmem:[#allocation7 + $0x80] sm:$0xff]  }
  0x50   :  { %706 = vmatpush3.bf16.msra.mxu1 %v816_v47 }
  0x51   :  { %707 = vmatprep.subr.bf16.mxu1 %v817_v48 }
  0x52   :  { %293 = vmatpush1.bf16.msra.mxu0 %v780_v20 }
  0x53   :  { %294 = vmatprep.subr.bf16.mxu0 %v781_v23 }
  0x54   :  { %708 = vmatpush3.bf16.msra.mxu1 %v818_v49 }
  0x55   :  { %709 = vmatprep.subr.bf16.mxu1 %v819_v50 }
  0x56   :  { %295 = vmatpush2.bf16.msra.mxu0 %v783_v24 }
  0x57   :  { %296 = vmatprep.subr.bf16.mxu0 %v784_v27 }
  0x58   :  { %710 = vmatpush3.bf16.msra.mxu1 %v820_v51 }
  0x59   :  { %726 = vmatprep.subr.bf16.mxu1 %v949_v52 }
  0x5a   :  { %297 = vmatpush2.bf16.msra.mxu0 %v786_v28 }
  0x5b   :  { %298 = vmatprep.subr.bf16.mxu0 %v787_v31  ;;  %v608_v31 = vld [vmem:[#allocation8 + $0x4] ss:$0 sm:$0xff] }
  0x5e   :  { %299 = vmatpush2.bf16.msra.mxu0 %v789_v33 }
  0x5f   :  { %300 = vmatprep.subr.bf16.mxu0 %v790_v35 }
  0x62   :  { %301 = vmatpush2.bf16.msra.mxu0 %v792_v36  ;;  %v612_v36 = vld [vmem:[#allocation8 + $0x3] ss:$0 sm:$0xff] }
  0x63   :  { %302 = vmatprep.subr.bf16.mxu0 %v793_v37 }
  0x66   :  { %303 = vmatpush2.bf16.msra.mxu0 %v795_v38 }
  0x67   :  { %304 = vmatprep.subr.bf16.mxu0 %v796_v39 }
  0x6a   :  { %305 = vmatpush2.bf16.msra.mxu0 %v798_v40 }
  0x6b   :  { %306 = vmatprep.subr.bf16.mxu0 %v799_v41 }
  0x6e   :  { %307 = vmatpush2.bf16.msra.mxu0 %v801_v42 }
  0x6f   :  { %308 = vmatprep.subr.bf16.mxu0 %v802_v43 }
  0x72   :  { %309 = vmatpush2.bf16.msra.mxu0 %v804_v44 }
  0x75   :  { %311 = vmatmul.mubr.bf16.vlgmr.msra.gmra.mxu0 %v72_v46 }
 0x135   :  { %v312_v60 = vpop.f32.mrf.mxu0 }
 0x136   :  { %v313_v61 = vadd.f32 %v312_v60, %v111_v58 }
 0x137   :  { %v314_v62 = vpop.f32.mrf.mxu0 }
 0x138   :  { %vm319_vm0 = vcmp.gt.f32.partialorder %v313_v61, 0.0  ;;  %v321_v63 = vmul.f32 0.01, %v313_v61  ;;  %v315_v0 = vadd.f32 %v314_v62, %v115_v59 }
 0x139   :  { %v316_v1 = vpop.f32.mrf.mxu0 }
 0x13a   :  { %vm320_vm1 = vcmp.gt.f32.partialorder %v315_v0, 0.0  ;;  %v322_v2 = vmul.f32 0.01, %v315_v0  ;;  %v323_v4 = vsel %vm319_vm0, %v313_v61, %v321_v63 }
 0x13b   :  { %v317_v3 = vpop.f32.mrf.mxu0  ;;  %v325_v8 = vpack.c.bf16 %v323_v4, %v323_v4 }
 0x13c   :  { %v324_v5 = vsel %vm320_vm1, %v315_v0, %v322_v2 }
 0x13d   :  { %v326_v6 = vpack.c.bf16 %v324_v5, %v324_v5 }
 0x13f   :  { %488 = vmatprep.mubr.bf16.mxu1 %v326_v6 }
 0x140   :  { %489 = vmatmul.mubr.bf16.vlgmr.msra.gmra.mxu1 %v325_v8 }
 0x141   :  { %727 = vmatpush3.bf16.msra.mxu1 %v821_v7  ;;  %742 = vmatprep.mubr.msk.bf16.mxu1 %vm950_vm2, %v949_v52 }
 0x142   :  { %728 = vmatprep.subr.bf16.mxu1 %v949_v52 }
 0x145   :  { %729 = vmatpush3.bf16.msra.mxu1 %v822_v9 }
 0x146   :  { %730 = vmatprep.subr.bf16.mxu1 %v949_v52 }
 0x149   :  { %731 = vmatpush3.bf16.msra.mxu1 %v823_v10 }
 0x14a   :  { %732 = vmatprep.subr.bf16.mxu1 %v949_v52 }
 0x14d   :  { %733 = vmatpush3.bf16.msra.mxu1 %v824_v11 }
 0x14e   :  { %734 = vmatprep.subr.bf16.mxu1 %v949_v52 }
 0x151   :  { %735 = vmatpush3.bf16.msra.mxu1 %v825_v12 }
 0x152   :  { %736 = vmatprep.subr.bf16.mxu1 %v949_v52 }
 0x155   :  { %737 = vmatpush3.bf16.msra.mxu1 %v826_v13 }
 0x156   :  { %738 = vmatprep.subr.bf16.mxu1 %v949_v52 }
 0x159   :  { %739 = vmatpush3.bf16.msra.mxu1 %v827_v14 }
 0x15a   :  { %740 = vmatprep.subr.bf16.mxu1 %v949_v52 }
 0x15d   :  { %741 = vmatpush3.bf16.msra.mxu1 %v828_v15 }
 0x200   :  { %v711_v16 = vpop.f32.mrf.mxu1 }
 0x202   :  { %v712_v18 = vpop.f32.mrf.mxu1 }
 0x203   :  { %v713_v19 = vadd.f32 %v712_v18, %v711_v16 }
 0x204   :  { %v714_v20 = vpop.f32.mrf.mxu1 }
 0x205   :  { %v491_v21 = vadd.f32 %v713_v19, %v359_v17 }
 0x206   :  { %v715_v22 = vpop.f32.mrf.mxu1 }
 0x207   :  { %vm496_vm3 = vcmp.gt.f32.partialorder %v491_v21, 0.0  ;;  %v497_v23 = vmul.f32 0.01, %v491_v21 }
 0x209   :  { %v498_v24 = vsel %vm496_vm3, %v491_v21, %v497_v23 }
 0x20a   :  { %v499_v25 = vpack.c.bf16 %v498_v24, %v498_v24 }
 0x20c   :  { %743 = vmatmul.mubr.bf16.vlgmr.msra.gmra.mxu1 %v499_v25 }
 0x2cc   :  { %v599_v27 = vpop.f32.mrf.mxu1 }
 0x2cd   :  { %v600_v28 = vadd.f32 %v599_v27, %v516_v26 }
 0x2ce   :  { %v744_v29 = vpop.f32.mrf.mxu1 }
 0x2cf   :  { %v606_v30 = vmul.f32 0.01, %v600_v28  ;;  %vm605_vm4 = vcmp.gt.f32.partialorder %v600_v28, 0.0 }
 0x2d0   :  { %v602_v32 = vpop.f32.mrf.mxu1 }
 0x2d1   :  { %v607_v33 = vsel %vm605_vm4, %v600_v28, %v606_v30 }
 0x2d2   :  { %v745_v34 = vpop.f32.mrf.mxu1  ;;  %v609_v35 = vmul.f32 %v608_v31, %v607_v33 }
 0x2d4   :  { %610 = vadd.xlane.f32.xlu0 %v609_v35 }
 0x35d   :  { %v611_v37 = vpop.xlane.xlu0 %610 }
 0x35e   :  { %v613_v38 = vadd.f32 %v612_v36, %v611_v37 }
 0x360   :  { %v694_v39 = vmul.f32 -1.442695, %v613_v38 }
 0x362   :  { %829 = vpow2.f32 %v694_v39 }
 0x36f   :  { %v830_v40 = vpop.eup %829 }
 0x370   :  { %v617_v41 = vadd.f32 1.0, %v830_v40 }
 0x372   :  { %831 = vrcp.f32 %v617_v41 }
 0x37f   :  { %v832_v42 = vpop.eup %831 }
 0x380   :  { %620 = vst [vmem:[#allocation10] sm:$0xff] %v832_v42 }
 0x381   :  { %924 = shalt.err (!%p921_p10)
}
 0x382   :  { %630 = dma.vmem_to_hbm [thread:$0]  %s628_s3, 128, %s996_s4, [#allocation4]  }
 0x383   :  { %939 = dma.done.wait [#allocation4], 128  }
 0x384   :  { %940 = vsyncadd [#allocation4], 4294967168 }
 0x385   :  { %634 = vsyncpa [#allocation3], 1 }
 0x386   :  { %635 = vsyncpa [#allocation6], 1 }
 0x387   :  { %636 = vsyncpa [#allocation9], 1 }
 0x388   :  { %637 = vsyncpa [#allocation4], 1 }

</bundles_post_ra>
